<compile_context>
chip_gen: v6e
topology: v6e:2x2x1
jax: 0.10.0
libtpu: 0.0.40
codegen_flags: <defaults>
</compile_context>

<pallas_src>
import functools

import jax
import jax.numpy as jnp
from jax.experimental import pallas as pl
from jax.experimental.pallas import tpu as pltpu

LANE = 128


def _round_up(x, m):
    return (x + m - 1) // m * m


def _vmem_limit_bytes(required_bytes):
    """Explicit scoped-VMEM limit: required + ~30% headroom, capped below physical."""
    cap = 64 * 1024 * 1024  # conservative (v7x physical) if the query fails
    try:
        cap = int(pltpu.get_tpu_info().vmem_capacity_bytes)
    except Exception:
        pass
    limit = max(int(required_bytes * 1.3), 32 * 1024 * 1024)
    return min(limit, int(cap * 0.85))


# ---------------------------------------------------------------------------
# One-time parameter preparation (hoisted out of the per-step path)
# ---------------------------------------------------------------------------
def prepare_lstm_params(w_ih, w_hh, b_hh=None, *, compute_dtype=jnp.bfloat16,
                        col_tile=None):
    """Fuse / permute / pad the LSTM weights once.

    w_ih: [4H, I]  (nn.Linear(input_size, 4H, bias=False).weight)
    w_hh: [4H, H]  (nn.Linear(hidden,     4H, bias=self.bias).weight)
    b_hh: [4H] or None

    Returns:
      w_fused: [Ip + Hp, 4*Hp]  (Ip/Hp rounded up to 128, zero padded) cast to
               `compute_dtype` (bf16 by default — the single-step cell is
               HBM-bound on the weight stream).
      b_fused: [1, 4*Hp] float32 (accumulation / gate math stay f32).

    Column layout: the 4*Hp columns are grouped per `col_tile` (default Hp,
    i.e. one group) as [hidden-block j][ i | f | o | g ], each slab col_tile
    wide, so every kernel instance sees one contiguous sigmoid slab and one
    tanh slab with 128-aligned slice boundaries.  col_tile < Hp enables
    sharding the gate columns across a second grid axis (v7x megacore then
    splits the weight instead of duplicating it per core).
    """
    four_h, input_size = w_ih.shape
    hidden = four_h // 4
    ip = _round_up(input_size, LANE)
    hp = _round_up(hidden, LANE)
    ct = hp if col_tile is None else int(col_tile)
    assert ct % LANE == 0 and hp % ct == 0, \
        "col_tile must be a multiple of 128 that divides round_up(H, 128)"
    ncol = hp // ct

    # torch gate order along 4H is (i, f, g, o); we want (i, f, o, g).
    perm = jnp.array([0, 1, 3, 2], dtype=jnp.int32)

    w_ih_t = jnp.pad(jnp.transpose(w_ih), ((0, ip - input_size), (0, 0)))   # [Ip, 4H]
    w_hh_t = jnp.pad(jnp.transpose(w_hh), ((0, hp - hidden), (0, 0)))       # [Hp, 4H]
    w = jnp.concatenate([w_ih_t, w_hh_t], axis=0)                           # [K, 4H]
    k = ip + hp
    w = jnp.take(w.reshape(k, 4, hidden), perm, axis=1)                     # (i,f,o,g)
    w = jnp.pad(w, ((0, 0), (0, 0), (0, hp - hidden)))                      # [K, 4, Hp]
    w = w.reshape(k, 4, ncol, ct).transpose(0, 2, 1, 3).reshape(k, 4 * hp)  # col groups
    if compute_dtype is not None:
        w = w.astype(compute_dtype)

    if b_hh is None:
        b = jnp.zeros((4, hidden), jnp.float32)
    else:
        b = b_hh.reshape(4, hidden).astype(jnp.float32)
    b = jnp.take(b, perm, axis=0)
    b = jnp.pad(b, ((0, 0), (0, hp - hidden)))                              # [4, Hp]
    b = b.reshape(4, ncol, ct).transpose(1, 0, 2).reshape(1, 4 * hp)
    return w, b


# ---------------------------------------------------------------------------
# Single-step kernel
# ---------------------------------------------------------------------------
def _lstm_cell_kernel(x_ref, hx_ref, cx_ref, w_ref, b_ref, hy_ref, cy_ref, *,
                      ip, ct):
    """One (batch tile, gate-column tile): two MXU matmuls into one f32
    accumulator (x @ W_ih^T + hx @ W_hh^T) + bias, then f32 gate math."""
    h_rows = w_ref.shape[0] - ip
    gates = jnp.dot(x_ref[...], w_ref[pl.ds(0, ip), :],
                    preferred_element_type=jnp.float32)
    gates = gates + jnp.dot(hx_ref[...], w_ref[pl.ds(ip, h_rows), :],
                            preferred_element_type=jnp.float32)
    gates = gates + b_ref[...]                      # (1, 4*ct) f32 broadcast

    # Column-tile gate order is (i, f, o | g): one contiguous sigmoid slab and
    # one tanh slab; every slice boundary is a multiple of ct (lane aligned).
    sig = jax.nn.sigmoid(gates[:, :3 * ct])
    g = jnp.tanh(gates[:, 3 * ct:])
    i = sig[:, :ct]
    f = sig[:, ct:2 * ct]
    o = sig[:, 2 * ct:3 * ct]

    cx = cx_ref[...].astype(jnp.float32)            # cell-state math stays f32
    cy = f * cx + i * g
    hy = o * jnp.tanh(cy)

    cy_ref[...] = cy.astype(cy_ref.dtype)
    hy_ref[...] = hy.astype(hy_ref.dtype)


@functools.partial(jax.jit, static_argnames=("hidden_size", "col_tile"))
def lstm_cell_forward(x, hx, cx, w_fused, b_fused, *, hidden_size, col_tile=None):
    """Single LSTMCell step.  x: [B, I], hx/cx: [B, H]; (w_fused, b_fused) from
    prepare_lstm_params (same col_tile).  Returns (hy, cy), each [B, H]."""
    B, I = x.shape
    H = hidden_size
    ip = _round_up(I, LANE)
    hp = _round_up(H, LANE)
    ct = hp if col_tile is None else int(col_tile)
    ncol = hp // ct
    K = ip + hp
    assert w_fused.shape == (K, 4 * hp), "w_fused does not match (I, H)"
    assert b_fused.shape == (1, 4 * hp)

    w_dt = jnp.dtype(w_fused.dtype)
    cx_dt = jnp.dtype(cx.dtype)
    out_dtype = x.dtype
    out_dt = jnp.dtype(out_dtype)

    # Batch tiling: sublane-pack aligned (16 rows for 2-byte dtypes), up to 256
    # rows per tile to amortise per-grid-step overhead and feed the MXU
    # full-width; both grid axes are "parallel" (megacore sharding).
    pack = max(8, 32 // w_dt.itemsize)
    bp0 = _round_up(B, pack)
    bm = min(bp0, 256)
    Bp = _round_up(bp0, bm)
    nb = Bp // bm

    # Activations cast to the weight dtype (deliberate trade-off, see header);
    # cx is padded only — the kernel upcasts it to f32.
    x_p = jnp.pad(x, ((0, Bp - B), (0, ip - I))).astype(w_fused.dtype)
    hx_p = jnp.pad(hx, ((0, Bp - B), (0, hp - H))).astype(w_fused.dtype)
    cx_p = jnp.pad(cx, ((0, Bp - B), (0, hp - H)))

    # Weight/bias are constant along the (inner) batch axis so they stay
    # VMEM-resident; with a single column tile they are constant over the whole
    # grid and Buffered(1) halves the dominant VMEM allocation (no DMA exposed).
    resident = ncol == 1
    w_pm = {"pipeline_mode": pl.Buffered(1)} if resident else {}
    w_spec = pl.BlockSpec((K, 4 * ct), lambda j, b: (0, j), **w_pm)
    b_spec = pl.BlockSpec((1, 4 * ct), lambda j, b: (0, j), **w_pm)

    nwb = 1 if resident else 2
    req = (K * 4 * ct * w_dt.itemsize * nwb          # weight buffer(s)
           + 4 * ct * 4 * nwb                        # bias
           + 2 * bm * ip * w_dt.itemsize             # x tiles (double buffered)
           + 2 * bm * hp * w_dt.itemsize             # hx tiles
           + 2 * bm * ct * cx_dt.itemsize            # cx tiles
           + 2 * 2 * bm * ct * out_dt.itemsize       # hy / cy tiles
           + 4 * bm * 4 * ct * 4)                    # f32 gate temporaries

    cost = pl.CostEstimate(
        flops=2 * Bp * K * 4 * hp,
        transcendentals=5 * Bp * hp,
        bytes_accessed=(K * 4 * hp * w_dt.itemsize + 4 * hp * 4
                        + Bp * (ip + hp) * w_dt.itemsize
                        + Bp * hp * cx_dt.itemsize
                        + 2 * Bp * hp * out_dt.itemsize),
    )

    kernel = functools.partial(_lstm_cell_kernel, ip=ip, ct=ct)

    hy_p, cy_p = pl.pallas_call(
        kernel,
        out_shape=(
            jax.ShapeDtypeStruct((Bp, hp), out_dtype),   # hy
            jax.ShapeDtypeStruct((Bp, hp), out_dtype),   # cy
        ),
        grid_spec=pltpu.PrefetchScalarGridSpec(
            num_scalar_prefetch=0,
            # Column tiles outer, batch tiles inner: each weight column block
            # is DMA'd once and stays resident across all batch tiles.
            grid=(ncol, nb),
            in_specs=[
                pl.BlockSpec((bm, ip), lambda j, b: (b, 0)),   # x batch tile
                pl.BlockSpec((bm, hp), lambda j, b: (b, 0)),   # hx batch tile
                pl.BlockSpec((bm, ct), lambda j, b: (b, j)),   # cx tile
                w_spec,                                        # fused weight
                b_spec,                                        # fused bias (f32)
            ],
            out_specs=(
                pl.BlockSpec((bm, ct), lambda j, b: (b, j)),
                pl.BlockSpec((bm, ct), lambda j, b: (b, j)),
            ),
        ),
        compiler_params=pltpu.CompilerParams(
            dimension_semantics=("parallel", "parallel"),
            vmem_limit_bytes=_vmem_limit_bytes(req),
        ),
        cost_estimate=cost,
    )(x_p, hx_p, cx_p, w_fused, b_fused)

    return hy_p[:B, :H], cy_p[:B, :H]


# ---------------------------------------------------------------------------
# Recurrent driver: T steps in one pallas_call, weights resident across steps
# ---------------------------------------------------------------------------
def _lstm_seq_kernel(x_ref, h0_ref, c0_ref, w_ref, b_ref,
                     hy_seq_ref, cT_ref, h_scr, c_scr, *, ip, hp):
    """Grid axis = timestep ("arbitrary").  The fused weight / bias stay
    VMEM-resident for all T steps; h/c are carried in f32 VMEM scratch, so the
    cell state never round-trips through a narrow dtype between steps."""
    t = pl.program_id(0)

    @pl.when(t == 0)
    def _():
        h_scr[...] = h0_ref[...].astype(jnp.float32)
        c_scr[...] = c0_ref[...].astype(jnp.float32)

    h_prev = h_scr[...].astype(w_ref.dtype)
    gates = jnp.dot(x_ref[0], w_ref[pl.ds(0, ip), :],
                    preferred_element_type=jnp.float32)
    gates = gates + jnp.dot(h_prev, w_ref[pl.ds(ip, hp), :],
                            preferred_element_type=jnp.float32)
    gates = gates + b_ref[...]

    sig = jax.nn.sigmoid(gates[:, :3 * hp])
    g = jnp.tanh(gates[:, 3 * hp:])
    i = sig[:, :hp]
    f = sig[:, hp:2 * hp]
    o = sig[:, 2 * hp:3 * hp]

    cy = f * c_scr[...] + i * g
    hy = o * jnp.tanh(cy)
    c_scr[...] = cy
    h_scr[...] = hy

    hy_seq_ref[0] = hy.astype(hy_seq_ref.dtype)

    @pl.when(t == pl.num_programs(0) - 1)
    def _():
        cT_ref[...] = cy                     # final cell state, f32


@functools.partial(jax.jit, static_argnames=("hidden_size",))
def lstm_sequence_forward(x_seq, h0, c0, w_fused, b_fused, *, hidden_size):
    """Runs T LSTMCell steps inside one pallas_call (the fused weight is read
    from HBM once).  Requires params prepared with col_tile=None.

    x_seq: [T, B, I], h0/c0: [B, H].
    Returns (hy_seq [T, B, H] in x dtype, hT [B, H], cT [B, H] float32)."""
    T, B, I = x_seq.shape
    H = hidden_size
    ip = _round_up(I, LANE)
    hp = _round_up(H, LANE)
    K = ip + hp
    assert w_fused.shape == (K, 4 * hp), "sequence driver needs col_tile=None params"
    assert b_fused.shape == (1, 4 * hp)

    w_dt = jnp.dtype(w_fused.dtype)
    out_dtype = x_seq.dtype
    out_dt = jnp.dtype(out_dtype)
    pack = max(8, 32 // w_dt.itemsize)
    Bp = _round_up(B, pack)
    # TODO(synk): add an outer "parallel" batch-tile grid axis for large B.

    x_p = jnp.pad(x_seq, ((0, 0), (0, Bp - B), (0, ip - I))).astype(w_fused.dtype)
    h0_p = jnp.pad(h0, ((0, Bp - B), (0, hp - H)))
    c0_p = jnp.pad(c0, ((0, Bp - B), (0, hp - H)))

    req = (K * 4 * hp * w_dt.itemsize + 4 * hp * 4                     # resident w + b
           + 2 * Bp * ip * w_dt.itemsize                               # x double buffer
           + Bp * hp * (jnp.dtype(h0.dtype).itemsize
                        + jnp.dtype(c0.dtype).itemsize)                # h0 / c0
           + 2 * Bp * hp * out_dt.itemsize + Bp * hp * 4               # outputs
           + 2 * Bp * hp * 4                                           # h/c scratch
           + 4 * Bp * 4 * hp * 4)                                      # f32 gate temps

    cost = pl.CostEstimate(
        flops=2 * T * Bp * K * 4 * hp,
        transcendentals=5 * T * Bp * hp,
        bytes_accessed=(K * 4 * hp * w_dt.itemsize + 4 * hp * 4
                        + T * Bp * ip * w_dt.itemsize
                        + T * Bp * hp * out_dt.itemsize
                        + 3 * Bp * hp * 4),
    )

    kernel = functools.partial(_lstm_seq_kernel, ip=ip, hp=hp)

    hy_seq_p, cT_p = pl.pallas_call(
        kernel,
        out_shape=(
            jax.ShapeDtypeStruct((T, Bp, hp), out_dtype),
            jax.ShapeDtypeStruct((Bp, hp), jnp.float32),
        ),
        grid_spec=pltpu.PrefetchScalarGridSpec(
            num_scalar_prefetch=0,
            grid=(T,),
            in_specs=[
                pl.BlockSpec((1, Bp, ip), lambda t: (t, 0, 0)),          # x_t
                pl.BlockSpec((Bp, hp), lambda t: (0, 0),
                             pipeline_mode=pl.Buffered(1)),              # h0
                pl.BlockSpec((Bp, hp), lambda t: (0, 0),
                             pipeline_mode=pl.Buffered(1)),              # c0
                pl.BlockSpec((K, 4 * hp), lambda t: (0, 0),
                             pipeline_mode=pl.Buffered(1)),              # weight
                pl.BlockSpec((1, 4 * hp), lambda t: (0, 0),
                             pipeline_mode=pl.Buffered(1)),              # bias
            ],
            out_specs=(
                pl.BlockSpec((1, Bp, hp), lambda t: (t, 0, 0)),          # hy per step
                pl.BlockSpec((Bp, hp), lambda t: (0, 0)),                # final c
            ),
            scratch_shapes=[
                pltpu.VMEM((Bp, hp), jnp.float32),   # h carry
                pltpu.VMEM((Bp, hp), jnp.float32),   # c carry (stays f32)
            ],
        ),
        compiler_params=pltpu.CompilerParams(
            dimension_semantics=("arbitrary",),
            vmem_limit_bytes=_vmem_limit_bytes(req),
        ),
        cost_estimate=cost,
    )(x_p, h0_p, c0_p, w_fused, b_fused)

    hy_seq = hy_seq_p[:, :B, :H]
    return hy_seq, hy_seq[-1], cT_p[:B, :H]


# ---------------------------------------------------------------------------
# Pure-JAX reference (mirrors the PyTorch forward exactly)
# ---------------------------------------------------------------------------
def _reference_forward(x, hx, cx, w_ih, w_hh, b_hh):
    H = hx.shape[1]
    gates = x @ w_ih.T + hx @ w_hh.T + b_hh
    i = jax.nn.sigmoid(gates[:, :H])
    f = jax.nn.sigmoid(gates[:, H:2 * H])
    g = jnp.tanh(gates[:, 2 * H:3 * H])
    o = jax.nn.sigmoid(gates[:, 3 * H:])
    cy = f * cx + i * g
    hy = o * jnp.tanh(cy)
    return hy, cy


def _reference_sequence(x_seq, h0, c0, w_ih, w_hh, b_hh):
    h, c = h0, c0
    hs = []
    for t in range(x_seq.shape[0]):
        h, c = _reference_forward(x_seq[t], h, c, w_ih, w_hh, b_hh)
        hs.append(h)
    return jnp.stack(hs, 0), h, c


if __name__ == "__main__":
    base_key = jax.random.PRNGKey(0)

    def make_params(key, input_size, hidden_size):
        kwih, kwhh, kbhh = jax.random.split(key, 3)
        bi = 1.0 / float(input_size) ** 0.5
        bh = 1.0 / float(hidden_size) ** 0.5
        w_ih = jax.random.uniform(kwih, (4 * hidden_size, input_size),
                                  jnp.float32, -bi, bi)
        w_hh = jax.random.uniform(kwhh, (4 * hidden_size, hidden_size),
                                  jnp.float32, -bh, bh)
        b_hh = jax.random.uniform(kbhh, (4 * hidden_size,), jnp.float32, -bh, bh)
        return w_ih, w_hh, b_hh

    def run_cell_case(key, batch, input_size, hidden_size, compute_dtype,
                      col_tile, atol, rtol):
        kp, kx, kh, kc = jax.random.split(key, 4)
        w_ih, w_hh, b_hh = make_params(kp, input_size, hidden_size)
        x = jax.random.normal(kx, (batch, input_size), jnp.float32)
        hx = jax.random.normal(kh, (batch, hidden_size), jnp.float32)
        cx = jax.random.normal(kc, (batch, hidden_size), jnp.float32)

        w_f, b_f = prepare_lstm_params(w_ih, w_hh, b_hh,
                                       compute_dtype=compute_dtype,
                                       col_tile=col_tile)
        hy, cy = lstm_cell_forward(x, hx, cx, w_f, b_f,
                                   hidden_size=hidden_size, col_tile=col_tile)
        jax.block_until_ready((hy, cy))

        hy_r, cy_r = _reference_forward(x, hx, cx, w_ih, w_hh, b_hh)
        assert hy.shape == (batch, hidden_size)
        assert cy.shape == (batch, hidden_size)
        assert jnp.allclose(hy, hy_r, atol=atol, rtol=rtol), "hy mismatch"
        assert jnp.allclose(cy, cy_r, atol=atol, rtol=rtol), "cy mismatch"

    k1, k2, k3, k4 = jax.random.split(base_key, 4)

    # 1) Small unaligned shapes, f32 weights, single column tile (Buffered(1) path).
    run_cell_case(k1, batch=6, input_size=16, hidden_size=32,
                  compute_dtype=jnp.float32, col_tile=None, atol=1e-3, rtol=1e-3)
    # 2) Lane-aligned shapes, bf16 weights+activations (default), f32 gate math.
    run_cell_case(k2, batch=8, input_size=128, hidden_size=128,
                  compute_dtype=jnp.bfloat16, col_tile=None, atol=5e-2, rtol=5e-2)
    # 3) Gate-column sharding (two column tiles), f32 weights.
    run_cell_case(k3, batch=20, input_size=64, hidden_size=256,
                  compute_dtype=jnp.float32, col_tile=128, atol=1e-3, rtol=1e-3)

    # 4) Recurrent driver: T steps, weights resident, f32 cell-state carry.
    T, B, I, H = 8, 4, 16, 32
    kp, kx, kh, kc = jax.random.split(k4, 4)
    w_ih, w_hh, b_hh = make_params(kp, I, H)
    x_seq = jax.random.normal(kx, (T, B, I), jnp.float32)
    h0 = jax.random.normal(kh, (B, H), jnp.float32)
    c0 = jax.random.normal(kc, (B, H), jnp.float32)
    w_f, b_f = prepare_lstm_params(w_ih, w_hh, b_hh, compute_dtype=jnp.float32)
    hy_seq, hT, cT = lstm_sequence_forward(x_seq, h0, c0, w_f, b_f, hidden_size=H)
    jax.block_until_ready((hy_seq, hT, cT))
    hy_seq_r, hT_r, cT_r = _reference_sequence(x_seq, h0, c0, w_ih, w_hh, b_hh)
    assert hy_seq.shape == (T, B, H)
    assert jnp.allclose(hy_seq, hy_seq_r, atol=2e-3, rtol=2e-3), "hy_seq mismatch"
    assert jnp.allclose(hT, hT_r, atol=2e-3, rtol=2e-3), "hT mismatch"
    assert jnp.allclose(cT, cT_r, atol=2e-3, rtol=2e-3), "cT mismatch"

    print("KERNEL_OK")
</pallas_src>

<mosaic_0001>
module attributes {stable_mosaic.version = 11 : i64} {
  func.func @_lstm_cell_kernel(%arg0: i32, %arg1: i32, %arg2: memref<8x128xf32, #tpu.memory_space<vmem>>, %arg3: memref<8x128xf32, #tpu.memory_space<vmem>>, %arg4: memref<8x128xf32, #tpu.memory_space<vmem>>, %arg5: memref<256x512xf32, #tpu.memory_space<vmem>>, %arg6: memref<1x512xf32, #tpu.memory_space<vmem>>, %arg7: memref<8x128xf32, #tpu.memory_space<vmem>>, %arg8: memref<8x128xf32, #tpu.memory_space<vmem>>) attributes {dimension_semantics = [#tpu.dimension_semantics<parallel>, #tpu.dimension_semantics<parallel>], iteration_bounds = array<i64: 1, 1>, scalar_prefetch = 0 : i64, scratch_operands = 0 : i64, tpu.core_type = #tpu.core_type<tc>, window_params = [{transform_indices = @transform_0, window_bounds = array<i64: 8, 128>}, {transform_indices = @transform_1, window_bounds = array<i64: 8, 128>}, {transform_indices = @transform_2, window_bounds = array<i64: 8, 128>}, {pipeline_mode = #tpu.pipeline_mode<synchronous>, transform_indices = @transform_3, window_bounds = array<i64: 256, 512>}, {pipeline_mode = #tpu.pipeline_mode<synchronous>, transform_indices = @transform_4, window_bounds = array<i64: 1, 512>}, {transform_indices = @transform_5, window_bounds = array<i64: 8, 128>}, {transform_indices = @transform_6, window_bounds = array<i64: 8, 128>}]} {
    %c0 = arith.constant 0 : index
    %c0_0 = arith.constant 0 : index
    %0 = vector.load %arg2[%c0, %c0_0] : memref<8x128xf32, #tpu.memory_space<vmem>>, vector<8x128xf32>
    %c0_1 = arith.constant 0 : index
    %c0_2 = arith.constant 0 : index
    %1 = vector.load %arg5[%c0_1, %c0_2] : memref<256x512xf32, #tpu.memory_space<vmem>>, vector<128x512xf32>
    %cst = arith.constant dense<0.000000e+00> : vector<8x512xf32>
    %2 = tpu.matmul %0, %1, %cst {dimension_numbers = #tpu.dot_dimension_numbers<[1], [0], [0], [1], [0, 0, 1, 1], [], []>} : vector<8x128xf32>, vector<128x512xf32>, vector<8x512xf32> -> vector<8x512xf32>
    %c0_3 = arith.constant 0 : index
    %c0_4 = arith.constant 0 : index
    %3 = vector.load %arg3[%c0_3, %c0_4] : memref<8x128xf32, #tpu.memory_space<vmem>>, vector<8x128xf32>
    %c128 = arith.constant 128 : index
    %c0_5 = arith.constant 0 : index
    %4 = vector.load %arg5[%c128, %c0_5] : memref<256x512xf32, #tpu.memory_space<vmem>>, vector<128x512xf32>
    %cst_6 = arith.constant dense<0.000000e+00> : vector<8x512xf32>
    %5 = tpu.matmul %3, %4, %cst_6 {dimension_numbers = #tpu.dot_dimension_numbers<[1], [0], [0], [1], [0, 0, 1, 1], [], []>} : vector<8x128xf32>, vector<128x512xf32>, vector<8x512xf32> -> vector<8x512xf32>
    %6 = arith.addf %2, %5 : vector<8x512xf32>
    %c0_7 = arith.constant 0 : index
    %c0_8 = arith.constant 0 : index
    %7 = vector.load %arg6[%c0_7, %c0_8] : memref<1x512xf32, #tpu.memory_space<vmem>>, vector<1x512xf32>
    %8 = vector.broadcast %7 : vector<1x512xf32> to vector<8x512xf32>
    %9 = arith.addf %6, %8 : vector<8x512xf32>
    %10 = vector.extract_strided_slice %9 {offsets = [0, 0], sizes = [8, 384], strides = [1, 1]} : vector<8x512xf32> to vector<8x384xf32>
    %11 = arith.negf %10 : vector<8x384xf32>
    %12 = math.exp %11 : vector<8x384xf32>
    %cst_9 = arith.constant 1.000000e+00 : f32
    %13 = vector.broadcast %cst_9 : f32 to vector<8x384xf32>
    %14 = arith.addf %13, %12 : vector<8x384xf32>
    %15 = arith.divf %13, %14 : vector<8x384xf32>
    %16 = vector.extract_strided_slice %9 {offsets = [0, 384], sizes = [8, 128], strides = [1, 1]} : vector<8x512xf32> to vector<8x128xf32>
    %17 = math.tanh %16 : vector<8x128xf32>
    %18 = vector.extract_strided_slice %15 {offsets = [0, 0], sizes = [8, 128], strides = [1, 1]} : vector<8x384xf32> to vector<8x128xf32>
    %19 = vector.extract_strided_slice %15 {offsets = [0, 128], sizes = [8, 128], strides = [1, 1]} : vector<8x384xf32> to vector<8x128xf32>
    %20 = vector.extract_strided_slice %15 {offsets = [0, 256], sizes = [8, 128], strides = [1, 1]} : vector<8x384xf32> to vector<8x128xf32>
    %c0_10 = arith.constant 0 : index
    %c0_11 = arith.constant 0 : index
    %21 = vector.load %arg4[%c0_10, %c0_11] : memref<8x128xf32, #tpu.memory_space<vmem>>, vector<8x128xf32>
    %22 = arith.mulf %19, %21 : vector<8x128xf32>
    %23 = arith.mulf %18, %17 : vector<8x128xf32>
    %24 = arith.addf %22, %23 : vector<8x128xf32>
    %25 = math.tanh %24 : vector<8x128xf32>
    %26 = arith.mulf %20, %25 : vector<8x128xf32>
    %c0_12 = arith.constant 0 : index
    %c0_13 = arith.constant 0 : index
    %27 = vector.load %arg8[%c0_12, %c0_13] : memref<8x128xf32, #tpu.memory_space<vmem>>, vector<8x128xf32>
    tpu.vector_store %arg8[%c0_12, %c0_13], %24 {strides = array<i32>} : memref<8x128xf32, #tpu.memory_space<vmem>>, vector<8x128xf32>,
    %c0_14 = arith.constant 0 : index
    %c0_15 = arith.constant 0 : index
    %28 = vector.load %arg7[%c0_14, %c0_15] : memref<8x128xf32, #tpu.memory_space<vmem>>, vector<8x128xf32>
    tpu.vector_store %arg7[%c0_14, %c0_15], %26 {strides = array<i32>} : memref<8x128xf32, #tpu.memory_space<vmem>>, vector<8x128xf32>,
    return
  }
  func.func @transform_0(%arg0: i32, %arg1: i32) -> (i32, i32) {
    %c0_i32 = arith.constant 0 : i32
    %c0_i32_0 = arith.constant 0 : i32
    return %arg1, %c0_i32 : i32, i32
  }
  func.func @transform_1(%arg0: i32, %arg1: i32) -> (i32, i32) {
    %c0_i32 = arith.constant 0 : i32
    %c0_i32_0 = arith.constant 0 : i32
    return %arg1, %c0_i32 : i32, i32
  }
  func.func @transform_2(%arg0: i32, %arg1: i32) -> (i32, i32) {
    %c0_i32 = arith.constant 0 : i32
    return %arg1, %arg0 : i32, i32
  }
  func.func @transform_3(%arg0: i32, %arg1: i32) -> (i32, i32) {
    %c0_i32 = arith.constant 0 : i32
    %c0_i32_0 = arith.constant 0 : i32
    return %c0_i32, %arg0 : i32, i32
  }
  func.func @transform_4(%arg0: i32, %arg1: i32) -> (i32, i32) {
    %c0_i32 = arith.constant 0 : i32
    %c0_i32_0 = arith.constant 0 : i32
    return %c0_i32, %arg0 : i32, i32
  }
  func.func @transform_5(%arg0: i32, %arg1: i32) -> (i32, i32) {
    %c0_i32 = arith.constant 0 : i32
    return %arg1, %arg0 : i32, i32
  }
  func.func @transform_6(%arg0: i32, %arg1: i32) -> (i32, i32) {
    %c0_i32 = arith.constant 0 : i32
    return %arg1, %arg0 : i32, i32
  }
}

</mosaic_0001>

<bundles_post_ra>
// kernel: lstm_cell_forward.1
= control target key start
LH: loop header
LB: loop body
LE: loop exit
PB: predicated region body
PF: predicated region fallthrough
CT: control target
= control target key end

     0   :  { %12 = vsyncpa [#allocation3], 0  ;;  %s691_s0 = inlined_call_operand.vmem [shape: f32[8,128], index: 0, kind: input, shape index: {}]   ;;  %s692_s1 = inlined_call_operand.vmem [shape: f32[8,128], index: 1, kind: input, shape index: {}]   ;;  %s693_s2 = inlined_call_operand.vmem [shape: f32[8,128], index: 2, kind: input, shape index: {}]   ;;  %s694_s3 = inlined_call_operand.hbm [shape: f32[256,512], index: 3, kind: input, shape index: {}]   ;;  %s695_s4 = inlined_call_operand.vmem [shape: f32[1,512], index: 4, kind: input, shape index: {}]   ;;  %s696_s5 = inlined_call_operand.hbm [shape: f32[8,128], index: 5, kind: output, shape index: {0}]   ;;  %s697_s6 = inlined_call_operand.hbm [shape: f32[8,128], index: 6, kind: output, shape index: {1}]  }
   0x1   :  { %13 = vsyncpa [#allocation4], 0 }
   0x2   :  { %14 = vsyncpa [#allocation7], 0  ;;  %s625_s21 = smov [#allocation2]  }
   0x3   :  { %s26_s22 = sshll.u32 %s625_s21, 4  ;;  %s27_s22 = int_to_ptr.vmem [resolvable:$true] %s26_s22 }
   0x4   :  { %s567_s23 = scalar_lea.vmem %s27_s22, 16384  ;;  %p572_p1 = scmp.lt.s32.totalorder %s27_s22, %s27_s22 }
   0x5   :  { %p568_p0 = scmp.ne.s32.totalorder %s27_s22, %s567_s23  ;;  %p573_p2 = scmp.lt.s32.totalorder %s567_s23, %s567_s23 }
   0x7   :  { %p574_p3 = por %p573_p2, %p572_p1 }
   0x9   :  { %p575_p4 = pnand %p574_p3, %p568_p0 }
   0xb   :  { %578 = shalt.err (!%p575_p4)
}
   0xc   :  { %s626_s24 = smov 512   ;;  %s627_s25 = smov 32  }
   0xd   :  { %32 = dma.hbm_to_vmem [thread:$0]  %s694_s3, 16384, %s27_s22, [#allocation3], %s626_s24, %s626_s24, %s627_s25  }
   0xe   :  { %619 = dma.done.wait [#allocation3], 16384  }
   0xf   :  { %620 = vsyncadd [#allocation3], 4294950912  ;;  %v628_v0 = vmov 0.0   ;;  %v165_v1 = vld [vmem:[#allocation2 + $0x3e8] sm:$0xff]  ;;  %v167_v2 = vld [vmem:[#allocation2 + $0x3f8] sm:$0xff]  ;;  %s629_s8 = smov [#allocation6]  }
  0x10   :  { %232 = vmatprep.mubr.f32.mxu0 %v628_v0  ;;  %303 = vmatprep.mubr.f32.mxu1 %v628_v0  ;;  %v164_v3 = vld [vmem:[#allocation2 + $0x3e0] sm:$0xff]  ;;  %v166_v4 = vld [vmem:[#allocation2 + $0x3f0] sm:$0xff]  ;;  %v161_v5 = vld [vmem:[#allocation2 + $0x3c8] sm:$0xff]  ;;  %s521_s9 = sshll.u32 %s629_s8, 4  ;;  %s522_s9 = int_to_ptr.vmem [resolvable:$true] %s521_s9 }
  0x11   :  { %168 = vmatprep.subr.mxu0 %v165_v1  ;;  %239 = vmatprep.subr.mxu1 %v167_v2  ;;  %v163_v6 = vld [vmem:[#allocation2 + $0x3d8] sm:$0xff]  ;;  %v160_v7 = vld [vmem:[#allocation2 + $0x3c0] sm:$0xff]  ;;  %v162_v8 = vld [vmem:[#allocation2 + $0x3d0] sm:$0xff]  ;;  %s579_s10 = scalar_lea.vmem %s522_s9, 128  ;;  %p584_p6 = scmp.lt.s32.totalorder %s522_s9, %s522_s9 }
  0x12   :  { %169 = vmatpush1.msra.mxu0 %v164_v3  ;;  %240 = vmatpush1.msra.mxu1 %v166_v4  ;;  %v157_v9 = vld [vmem:[#allocation2 + $0x3a8] sm:$0xff]  ;;  %v159_v10 = vld [vmem:[#allocation2 + $0x3b8] sm:$0xff]  ;;  %v156_v11 = vld [vmem:[#allocation2 + $0x3a0] sm:$0xff]  ;;  %p580_p5 = scmp.ne.s32.totalorder %s522_s9, %s579_s10  ;;  %p585_p7 = scmp.lt.s32.totalorder %s579_s10, %s579_s10 }
  0x13   :  { %170 = vmatprep.subr.mxu0 %v161_v5  ;;  %241 = vmatprep.subr.mxu1 %v163_v6  ;;  %v158_v12 = vld [vmem:[#allocation2 + $0x3b0] sm:$0xff]  ;;  %v153_v13 = vld [vmem:[#allocation2 + $0x388] sm:$0xff]  ;;  %v155_v14 = vld [vmem:[#allocation2 + $0x398] sm:$0xff] }
  0x14   :  { %171 = vmatpush1.msra.mxu0 %v160_v7  ;;  %242 = vmatpush1.msra.mxu1 %v162_v8  ;;  %v152_v15 = vld [vmem:[#allocation2 + $0x380] sm:$0xff]  ;;  %v154_v16 = vld [vmem:[#allocation2 + $0x390] sm:$0xff]  ;;  %v149_v17 = vld [vmem:[#allocation2 + $0x368] sm:$0xff]  ;;  %p586_p8 = por %p585_p7, %p584_p6 }
  0x15   :  { %172 = vmatprep.subr.mxu0 %v157_v9  ;;  %243 = vmatprep.subr.mxu1 %v159_v10  ;;  %v151_v18 = vld [vmem:[#allocation2 + $0x378] sm:$0xff]  ;;  %v148_v19 = vld [vmem:[#allocation2 + $0x360] sm:$0xff]  ;;  %v150_v20 = vld [vmem:[#allocation2 + $0x370] sm:$0xff] }
  0x16   :  { %173 = vmatpush1.msra.mxu0 %v156_v11  ;;  %244 = vmatpush1.msra.mxu1 %v158_v12  ;;  %v145_v21 = vld [vmem:[#allocation2 + $0x348] sm:$0xff]  ;;  %v147_v22 = vld [vmem:[#allocation2 + $0x358] sm:$0xff]  ;;  %v144_v23 = vld [vmem:[#allocation2 + $0x340] sm:$0xff]  ;;  %p587_p9 = pnand %p586_p8, %p580_p5 }
  0x17   :  { %174 = vmatprep.subr.mxu0 %v153_v13  ;;  %245 = vmatprep.subr.mxu1 %v155_v14  ;;  %v146_v24 = vld [vmem:[#allocation2 + $0x350] sm:$0xff]  ;;  %v141_v25 = vld [vmem:[#allocation2 + $0x328] sm:$0xff]  ;;  %v143_v26 = vld [vmem:[#allocation2 + $0x338] sm:$0xff] }
  0x18   :  { %175 = vmatpush1.msra.mxu0 %v152_v15  ;;  %246 = vmatpush1.msra.mxu1 %v154_v16  ;;  %v140_v27 = vld [vmem:[#allocation2 + $0x320] sm:$0xff]  ;;  %v142_v28 = vld [vmem:[#allocation2 + $0x330] sm:$0xff]  ;;  %v137_v29 = vld [vmem:[#allocation2 + $0x308] sm:$0xff] }
  0x19   :  { %176 = vmatprep.subr.mxu0 %v149_v17  ;;  %247 = vmatprep.subr.mxu1 %v151_v18  ;;  %v139_v30 = vld [vmem:[#allocation2 + $0x318] sm:$0xff]  ;;  %v136_v31 = vld [vmem:[#allocation2 + $0x300] sm:$0xff]  ;;  %v138_v32 = vld [vmem:[#allocation2 + $0x310] sm:$0xff] }
  0x1a   :  { %177 = vmatpush1.msra.mxu0 %v148_v19  ;;  %248 = vmatpush1.msra.mxu1 %v150_v20  ;;  %v133_v33 = vld [vmem:[#allocation2 + $0x2e8] sm:$0xff]  ;;  %v135_v34 = vld [vmem:[#allocation2 + $0x2f8] sm:$0xff]  ;;  %v132_v35 = vld [vmem:[#allocation2 + $0x2e0] sm:$0xff] }
  0x1b   :  { %178 = vmatprep.subr.mxu0 %v145_v21  ;;  %249 = vmatprep.subr.mxu1 %v147_v22  ;;  %v134_v36 = vld [vmem:[#allocation2 + $0x2f0] sm:$0xff]  ;;  %v129_v37 = vld [vmem:[#allocation2 + $0x2c8] sm:$0xff]  ;;  %v131_v38 = vld [vmem:[#allocation2 + $0x2d8] sm:$0xff] }
  0x1c   :  { %179 = vmatpush1.msra.mxu0 %v144_v23  ;;  %250 = vmatpush1.msra.mxu1 %v146_v24  ;;  %v128_v39 = vld [vmem:[#allocation2 + $0x2c0] sm:$0xff]  ;;  %v130_v40 = vld [vmem:[#allocation2 + $0x2d0] sm:$0xff]  ;;  %v125_v41 = vld [vmem:[#allocation2 + $0x2a8] sm:$0xff] }
  0x1d   :  { %180 = vmatprep.subr.mxu0 %v141_v25  ;;  %251 = vmatprep.subr.mxu1 %v143_v26  ;;  %v127_v42 = vld [vmem:[#allocation2 + $0x2b8] sm:$0xff]  ;;  %v124_v43 = vld [vmem:[#allocation2 + $0x2a0] sm:$0xff]  ;;  %v126_v44 = vld [vmem:[#allocation2 + $0x2b0] sm:$0xff] }
  0x1e   :  { %181 = vmatpush1.msra.mxu0 %v140_v27  ;;  %252 = vmatpush1.msra.mxu1 %v142_v28  ;;  %v121_v45 = vld [vmem:[#allocation2 + $0x288] sm:$0xff]  ;;  %v123_v46 = vld [vmem:[#allocation2 + $0x298] sm:$0xff]  ;;  %v120_v47 = vld [vmem:[#allocation2 + $0x280] sm:$0xff] }
  0x1f   :  { %182 = vmatprep.subr.mxu0 %v137_v29  ;;  %253 = vmatprep.subr.mxu1 %v139_v30  ;;  %v122_v48 = vld [vmem:[#allocation2 + $0x290] sm:$0xff]  ;;  %v117_v49 = vld [vmem:[#allocation2 + $0x268] sm:$0xff]  ;;  %v119_v50 = vld [vmem:[#allocation2 + $0x278] sm:$0xff] }
  0x20   :  { %183 = vmatpush1.msra.mxu0 %v136_v31  ;;  %254 = vmatpush1.msra.mxu1 %v138_v32  ;;  %v116_v51 = vld [vmem:[#allocation2 + $0x260] sm:$0xff]  ;;  %v118_v52 = vld [vmem:[#allocation2 + $0x270] sm:$0xff]  ;;  %v113_v53 = vld [vmem:[#allocation2 + $0x248] sm:$0xff] }
  0x21   :  { %184 = vmatprep.subr.mxu0 %v133_v33  ;;  %255 = vmatprep.subr.mxu1 %v135_v34  ;;  %v115_v54 = vld [vmem:[#allocation2 + $0x258] sm:$0xff]  ;;  %v112_v55 = vld [vmem:[#allocation2 + $0x240] sm:$0xff]  ;;  %v114_v56 = vld [vmem:[#allocation2 + $0x250] sm:$0xff] }
  0x22   :  { %185 = vmatpush1.msra.mxu0 %v132_v35  ;;  %256 = vmatpush1.msra.mxu1 %v134_v36  ;;  %v109_v57 = vld [vmem:[#allocation2 + $0x228] sm:$0xff]  ;;  %v111_v58 = vld [vmem:[#allocation2 + $0x238] sm:$0xff]  ;;  %v108_v59 = vld [vmem:[#allocation2 + $0x220] sm:$0xff] }
  0x23   :  { %186 = vmatprep.subr.mxu0 %v129_v37  ;;  %257 = vmatprep.subr.mxu1 %v131_v38  ;;  %v110_v60 = vld [vmem:[#allocation2 + $0x230] sm:$0xff]  ;;  %v105_v61 = vld [vmem:[#allocation2 + $0x208] sm:$0xff]  ;;  %v107_v62 = vld [vmem:[#allocation2 + $0x218] sm:$0xff] }
  0x24   :  { %187 = vmatpush1.msra.mxu0 %v128_v39  ;;  %258 = vmatpush1.msra.mxu1 %v130_v40  ;;  %v104_v63 = vld [vmem:[#allocation2 + $0x200] sm:$0xff]  ;;  %v106_v1 = vld [vmem:[#allocation2 + $0x210] sm:$0xff]  ;;  %v100_v3 = vld [vmem:[#allocation2 + $0x1e8] sm:$0xff] }
  0x25   :  { %188 = vmatprep.subr.mxu0 %v125_v41  ;;  %259 = vmatprep.subr.mxu1 %v127_v42  ;;  %v103_v2 = vld [vmem:[%s692_s1] sm:$0xff]  ;;  %v102_v4 = vld [vmem:[#allocation2 + $0x1f8] sm:$0xff]  ;;  %v101_v6 = vld [vmem:[#allocation2 + $0x1f0] sm:$0xff] }
  0x26   :  { %189 = vmatpush1.msra.mxu0 %v124_v43  ;;  %260 = vmatpush1.msra.mxu1 %v126_v44  ;;  %v99_v5 = vld [vmem:[#allocation2 + $0x1e0] sm:$0xff]  ;;  %v96_v7 = vld [vmem:[#allocation2 + $0x1c8] sm:$0xff]  ;;  %v98_v8 = vld [vmem:[#allocation2 + $0x1d8] sm:$0xff] }
  0x27   :  { %190 = vmatprep.subr.mxu0 %v121_v45  ;;  %261 = vmatprep.subr.mxu1 %v123_v46  ;;  %v95_v9 = vld [vmem:[#allocation2 + $0x1c0] sm:$0xff]  ;;  %v97_v10 = vld [vmem:[#allocation2 + $0x1d0] sm:$0xff]  ;;  %v92_v11 = vld [vmem:[#allocation2 + $0x1a8] sm:$0xff] }
  0x28   :  { %191 = vmatpush1.msra.mxu0 %v120_v47  ;;  %262 = vmatpush1.msra.mxu1 %v122_v48  ;;  %v94_v12 = vld [vmem:[#allocation2 + $0x1b8] sm:$0xff]  ;;  %v91_v13 = vld [vmem:[#allocation2 + $0x1a0] sm:$0xff]  ;;  %v93_v14 = vld [vmem:[#allocation2 + $0x1b0] sm:$0xff] }
  0x29   :  { %192 = vmatprep.subr.mxu0 %v117_v49  ;;  %263 = vmatprep.subr.mxu1 %v119_v50  ;;  %v88_v15 = vld [vmem:[#allocation2 + $0x188] sm:$0xff]  ;;  %v90_v16 = vld [vmem:[#allocation2 + $0x198] sm:$0xff]  ;;  %v87_v17 = vld [vmem:[#allocation2 + $0x180] sm:$0xff] }
  0x2a   :  { %193 = vmatpush1.msra.mxu0 %v116_v51  ;;  %264 = vmatpush1.msra.mxu1 %v118_v52  ;;  %v89_v18 = vld [vmem:[#allocation2 + $0x190] sm:$0xff]  ;;  %v84_v19 = vld [vmem:[#allocation2 + $0x168] sm:$0xff]  ;;  %v86_v20 = vld [vmem:[#allocation2 + $0x178] sm:$0xff] }
  0x2b   :  { %194 = vmatprep.subr.mxu0 %v113_v53  ;;  %265 = vmatprep.subr.mxu1 %v115_v54  ;;  %v83_v21 = vld [vmem:[#allocation2 + $0x160] sm:$0xff]  ;;  %v85_v22 = vld [vmem:[#allocation2 + $0x170] sm:$0xff]  ;;  %v80_v23 = vld [vmem:[#allocation2 + $0x148] sm:$0xff] }
  0x2c   :  { %195 = vmatpush1.msra.mxu0 %v112_v55  ;;  %266 = vmatpush1.msra.mxu1 %v114_v56  ;;  %v82_v24 = vld [vmem:[#allocation2 + $0x158] sm:$0xff]  ;;  %v79_v25 = vld [vmem:[#allocation2 + $0x140] sm:$0xff]  ;;  %v81_v26 = vld [vmem:[#allocation2 + $0x150] sm:$0xff] }
  0x2d   :  { %196 = vmatprep.subr.mxu0 %v109_v57  ;;  %267 = vmatprep.subr.mxu1 %v111_v58  ;;  %v76_v27 = vld [vmem:[#allocation2 + $0x128] sm:$0xff]  ;;  %v78_v28 = vld [vmem:[#allocation2 + $0x138] sm:$0xff]  ;;  %v75_v29 = vld [vmem:[#allocation2 + $0x120] sm:$0xff] }
  0x2e   :  { %197 = vmatpush1.msra.mxu0 %v108_v59  ;;  %268 = vmatpush1.msra.mxu1 %v110_v60  ;;  %v77_v30 = vld [vmem:[#allocation2 + $0x130] sm:$0xff]  ;;  %v72_v31 = vld [vmem:[#allocation2 + $0x108] sm:$0xff]  ;;  %v74_v32 = vld [vmem:[#allocation2 + $0x118] sm:$0xff] }
  0x2f   :  { %198 = vmatprep.subr.mxu0 %v105_v61  ;;  %269 = vmatprep.subr.mxu1 %v107_v62  ;;  %v71_v33 = vld [vmem:[#allocation2 + $0x100] sm:$0xff]  ;;  %v73_v34 = vld [vmem:[#allocation2 + $0x110] sm:$0xff]  ;;  %v68_v35 = vld [vmem:[#allocation2 + $0xe8] sm:$0xff] }
  0x30   :  { %199 = vmatpush1.msra.mxu0 %v104_v63  ;;  %270 = vmatpush1.msra.mxu1 %v106_v1  ;;  %v70_v36 = vld [vmem:[#allocation2 + $0xf8] sm:$0xff]  ;;  %v67_v37 = vld [vmem:[#allocation2 + $0xe0] sm:$0xff]  ;;  %v69_v38 = vld [vmem:[#allocation2 + $0xf0] sm:$0xff] }
  0x31   :  { %233 = vmatmul.mubr.f32.vlgmr.msra.gmra.mxu0 %v103_v2  ;;  %310 = vmatprep.subr.mxu0 %v100_v3  ;;  %v64_v39 = vld [vmem:[#allocation2 + $0xc8] sm:$0xff]  ;;  %v66_v40 = vld [vmem:[#allocation2 + $0xd8] sm:$0xff]  ;;  %v63_v41 = vld [vmem:[#allocation2 + $0xc0] sm:$0xff] }
  0x32   :  { %381 = vmatprep.subr.mxu1 %v102_v4  ;;  %304 = vmatmul.mubr.f32.vlgmr.msra.gmra.mxu1 %v103_v2  ;;  %v65_v42 = vld [vmem:[#allocation2 + $0xd0] sm:$0xff]  ;;  %v60_v43 = vld [vmem:[#allocation2 + $0xa8] sm:$0xff]  ;;  %v62_v44 = vld [vmem:[#allocation2 + $0xb8] sm:$0xff] }
  0x33   :  { %311 = vmatpush1.msra.mxu0 %v99_v5  ;;  %382 = vmatpush1.msra.mxu1 %v101_v6  ;;  %v59_v45 = vld [vmem:[#allocation2 + $0xa0] sm:$0xff]  ;;  %v61_v46 = vld [vmem:[#allocation2 + $0xb0] sm:$0xff]  ;;  %v56_v47 = vld [vmem:[#allocation2 + $0x88] sm:$0xff]  ;;  %v454_v5 = vlaneseq }
  0x34   :  { %312 = vmatprep.subr.mxu0 %v96_v7  ;;  %383 = vmatprep.subr.mxu1 %v98_v8  ;;  %v58_v48 = vld [vmem:[#allocation2 + $0x98] sm:$0xff]  ;;  %v55_v49 = vld [vmem:[#allocation2 + $0x80] sm:$0xff]  ;;  %v57_v50 = vld [vmem:[#allocation2 + $0x90] sm:$0xff] }
  0x35   :  { %313 = vmatpush1.msra.mxu0 %v95_v9  ;;  %384 = vmatpush1.msra.mxu1 %v97_v10  ;;  %v52_v51 = vld [vmem:[#allocation2 + $0x68] sm:$0xff]  ;;  %v54_v52 = vld [vmem:[#allocation2 + $0x78] sm:$0xff]  ;;  %v51_v53 = vld [vmem:[#allocation2 + $0x60] sm:$0xff]  ;;  %v455_v6 = vshrl.u32 %v454_v5, 7 }
  0x36   :  { %314 = vmatprep.subr.mxu0 %v92_v11  ;;  %385 = vmatprep.subr.mxu1 %v94_v12  ;;  %v53_v54 = vld [vmem:[#allocation2 + $0x70] sm:$0xff]  ;;  %v48_v55 = vld [vmem:[#allocation2 + $0x48] sm:$0xff]  ;;  %v50_v56 = vld [vmem:[#allocation2 + $0x58] sm:$0xff] }
  0x37   :  { %315 = vmatpush1.msra.mxu0 %v91_v13  ;;  %386 = vmatpush1.msra.mxu1 %v93_v14  ;;  %v47_v57 = vld [vmem:[#allocation2 + $0x40] sm:$0xff]  ;;  %v49_v58 = vld [vmem:[#allocation2 + $0x50] sm:$0xff]  ;;  %v44_v59 = vld [vmem:[#allocation2 + $0x28] sm:$0xff]  ;;  %v456_v8 = vsub.s32 0, %v455_v6  ;;  %v460_v10 = vsub.s32 1, %v455_v6 }
  0x38   :  { %316 = vmatprep.subr.mxu0 %v88_v15  ;;  %387 = vmatprep.subr.mxu1 %v90_v16  ;;  %v46_v60 = vld [vmem:[#allocation2 + $0x38] sm:$0xff]  ;;  %v43_v61 = vld [vmem:[#allocation2 + $0x20] sm:$0xff]  ;;  %v45_v62 = vld [vmem:[#allocation2 + $0x30] sm:$0xff] }
  0x39   :  { %317 = vmatpush1.msra.mxu0 %v87_v17  ;;  %388 = vmatpush1.msra.mxu1 %v89_v18  ;;  %v40_v63 = vld [vmem:[#allocation2 + $0x8] sm:$0xff]  ;;  %v42_v1 = vld [vmem:[#allocation2 + $0x18] sm:$0xff]  ;;  %v39_v2 = vld [vmem:[#allocation2] sm:$0xff] }
  0x3a   :  { %318 = vmatprep.subr.mxu0 %v84_v19  ;;  %389 = vmatprep.subr.mxu1 %v86_v20  ;;  %v41_v3 = vld [vmem:[#allocation2 + $0x10] sm:$0xff]  ;;  %v38_v4 = vld [vmem:[%s691_s0] sm:$0xff] }
  0x3b   :  { %319 = vmatpush1.msra.mxu0 %v83_v21  ;;  %390 = vmatpush1.msra.mxu1 %v85_v22  ;;  %v452_v9 = vld [vmem:[%s695_s4] sm:$0xf]  ;;  %v464_v22 = vsub.s32 2, %v455_v6 }
  0x3c   :  { %320 = vmatprep.subr.mxu0 %v80_v23  ;;  %391 = vmatprep.subr.mxu1 %v82_v24  ;;  %v457_v12 = vrot.slane %v452_v9, %v456_v8  ;;  %v461_v16 = vrot.slane %v452_v9, %v460_v10 }
  0x3d   :  { %321 = vmatpush1.msra.mxu0 %v79_v25  ;;  %392 = vmatpush1.msra.mxu1 %v81_v26  ;;  %v465_v26 = vrot.slane %v452_v9, %v464_v22 }
  0x3e   :  { %322 = vmatprep.subr.mxu0 %v76_v27  ;;  %393 = vmatprep.subr.mxu1 %v78_v28  ;;  %v468_v27 = vsub.s32 3, %v455_v6 }
  0x3f   :  { %323 = vmatpush1.msra.mxu0 %v75_v29  ;;  %394 = vmatpush1.msra.mxu1 %v77_v30 }
  0x40   :  { %324 = vmatprep.subr.mxu0 %v72_v31  ;;  %395 = vmatprep.subr.mxu1 %v74_v32  ;;  %v469_v31 = vrot.slane %v452_v9, %v468_v27 }
  0x41   :  { %325 = vmatpush1.msra.mxu0 %v71_v33  ;;  %396 = vmatpush1.msra.mxu1 %v73_v34 }
  0x42   :  { %326 = vmatprep.subr.mxu0 %v68_v35  ;;  %397 = vmatprep.subr.mxu1 %v70_v36 }
  0x43   :  { %327 = vmatpush1.msra.mxu0 %v67_v37  ;;  %398 = vmatpush1.msra.mxu1 %v69_v38 }
  0x44   :  { %328 = vmatprep.subr.mxu0 %v64_v39  ;;  %399 = vmatprep.subr.mxu1 %v66_v40  ;;  %v497_v40 = vld [vmem:[%s693_s2] sm:$0xff] }
  0x45   :  { %329 = vmatpush1.msra.mxu0 %v63_v41  ;;  %400 = vmatpush1.msra.mxu1 %v65_v42 }
  0x46   :  { %330 = vmatprep.subr.mxu0 %v60_v43  ;;  %401 = vmatprep.subr.mxu1 %v62_v44 }
  0x47   :  { %331 = vmatpush1.msra.mxu0 %v59_v45  ;;  %402 = vmatpush1.msra.mxu1 %v61_v46 }
  0x48   :  { %332 = vmatprep.subr.mxu0 %v56_v47  ;;  %403 = vmatprep.subr.mxu1 %v58_v48 }
  0x49   :  { %333 = vmatpush1.msra.mxu0 %v55_v49  ;;  %404 = vmatpush1.msra.mxu1 %v57_v50 }
  0x4a   :  { %334 = vmatprep.subr.mxu0 %v52_v51  ;;  %405 = vmatprep.subr.mxu1 %v54_v52 }
  0x4b   :  { %335 = vmatpush1.msra.mxu0 %v51_v53  ;;  %406 = vmatpush1.msra.mxu1 %v53_v54 }
  0x4c   :  { %336 = vmatprep.subr.mxu0 %v48_v55  ;;  %407 = vmatprep.subr.mxu1 %v50_v56 }
  0x4d   :  { %337 = vmatpush1.msra.mxu0 %v47_v57  ;;  %408 = vmatpush1.msra.mxu1 %v49_v58 }
  0x4e   :  { %338 = vmatprep.subr.mxu0 %v44_v59  ;;  %409 = vmatprep.subr.mxu1 %v46_v60 }
  0x4f   :  { %339 = vmatpush1.msra.mxu0 %v43_v61  ;;  %410 = vmatpush1.msra.mxu1 %v45_v62 }
  0x50   :  { %340 = vmatprep.subr.mxu0 %v40_v63  ;;  %411 = vmatprep.subr.mxu1 %v42_v1 }
  0x51   :  { %341 = vmatpush1.msra.mxu0 %v39_v2  ;;  %374 = vmatprep.mubr.f32.mxu0 %v628_v0 }
  0x52   :  { %412 = vmatpush1.msra.mxu1 %v41_v3  ;;  %445 = vmatprep.mubr.f32.mxu1 %v628_v0 }
  0x53   :  { %375 = vmatmul.mubr.f32.vlgmr.msra.gmra.mxu0 %v38_v4  ;;  %446 = vmatmul.mubr.f32.vlgmr.msra.gmra.mxu1 %v38_v4 }
  0xf1   :  { %v234_v7 = vpop.f32.mrf.mxu0 }
  0xf2   :  { %v305_v14 = vpop.f32.mrf.mxu1 }
  0xf3   :  { %v236_v11 = vpop.f32.mrf.mxu0 }
  0xf4   :  { %v307_v19 = vpop.f32.mrf.mxu1 }
 0x113   :  { %v376_v13 = vpop.f32.mrf.mxu0  ;;  %v447_v23 = vpop.f32.mrf.mxu1 }
 0x114   :  { %v377_v15 = vadd.f32 %v376_v13, %v234_v7  ;;  %v448_v25 = vadd.f32 %v447_v23, %v305_v14 }
 0x115   :  { %v378_v17 = vpop.f32.mrf.mxu0  ;;  %v449_v28 = vpop.f32.mrf.mxu1 }
 0x116   :  { %v474_v18 = vadd.f32 %v457_v12, %v377_v15  ;;  %v379_v0 = vadd.f32 %v378_v17, %v236_v11  ;;  %v476_v29 = vadd.f32 %v465_v26, %v448_v25  ;;  %v450_v30 = vadd.f32 %v449_v28, %v307_v19 }
 0x118   :  { %v534_v20 = vmul.f32 -1.442695, %v474_v18  ;;  %v475_v21 = vadd.f32 %v461_v16, %v379_v0  ;;  %v536_v32 = vmul.f32 -1.442695, %v476_v29  ;;  %v477_v34 = vadd.f32 %v469_v31, %v450_v30 }
 0x11a   :  { %543 = vpow2.f32 %v534_v20  ;;  %v535_v24 = vmul.f32 -1.442695, %v475_v21 }
 0x11c   :  { %545 = vpow2.f32 %v535_v24 }
 0x11d   :  { %547 = vpow2.f32 %v536_v32 }
 0x127   :  { %v544_v33 = vpop.eup %543 }
 0x128   :  { %v487_v35 = vadd.f32 1.0, %v544_v33 }
 0x129   :  { %v546_v36 = vpop.eup %545 }
 0x12a   :  { %549 = vrcp.f32 %v487_v35  ;;  %v488_v37 = vadd.f32 1.0, %v546_v36  ;;  %v548_v38 = vpop.eup %547 }
 0x12b   :  { %551 = vtanh.f32 %v477_v34  ;;  %v489_v43 = vadd.f32 1.0, %v548_v38 }
 0x12c   :  { %553 = vrcp.f32 %v488_v37 }
 0x12d   :  { %555 = vrcp.f32 %v489_v43 }
 0x137   :  { %v550_v39 = vpop.eup %549 }
 0x138   :  { %v552_v41 = vpop.eup %551 }
 0x139   :  { %v554_v42 = vpop.eup %553  ;;  %v499_v45 = vmul.f32 %v552_v41, %v550_v39 }
 0x13a   :  { %v498_v44 = vmul.f32 %v554_v42, %v497_v40 }
 0x13c   :  { %v500_v46 = vadd.f32 %v499_v45, %v498_v44 }
 0x13e   :  { %503 = vst [vmem:[#allocation6] sm:$0xff] %v500_v46  ;;  %557 = vtanh.f32 %v500_v46 }
 0x13f   :  { %590 = shalt.err (!%p587_p9)
}
 0x140   :  { %524 = dma.vmem_to_hbm [thread:$0]  %s522_s9, 128, %s697_s6, [#allocation7]   ;;  %v556_v47 = vpop.eup %555 }
 0x141   :  { %s630_s12 = smov [#allocation5]  }
 0x142   :  { %s511_s13 = sshll.u32 %s630_s12, 4  ;;  %s512_s13 = int_to_ptr.vmem [resolvable:$true] %s511_s13 }
 0x143   :  { %s599_s14 = scalar_lea.vmem %s512_s13, 128  ;;  %p604_p11 = scmp.lt.s32.totalorder %s512_s13, %s512_s13 }
 0x144   :  { %p600_p10 = scmp.ne.s32.totalorder %s512_s13, %s599_s14  ;;  %p605_p12 = scmp.lt.s32.totalorder %s599_s14, %s599_s14 }
 0x146   :  { %p606_p13 = por %p605_p12, %p604_p11 }
 0x148   :  { %p607_p0 = pnand %p606_p13, %p600_p10 }
 0x14b   :  { %v558_v48 = vpop.eup %557 }
 0x14c   :  { %v502_v49 = vmul.f32 %v558_v48, %v556_v47 }
 0x14e   :  { %504 = vst [vmem:[#allocation5] sm:$0xff] %v502_v49 }
 0x14f   :  { %610 = shalt.err (!%p607_p0)
}
 0x150   :  { %514 = dma.vmem_to_hbm [thread:$0]  %s512_s13, 128, %s696_s5, [#allocation4]  }
 0x151   :  { %621 = dma.done.wait [#allocation4], 128  }
 0x152   :  { %622 = vsyncadd [#allocation4], 4294967168 }
 0x153   :  { %623 = dma.done.wait [#allocation7], 128  }
 0x154   :  { %624 = vsyncadd [#allocation7], 4294967168 }
 0x155   :  { %531 = vsyncpa [#allocation3], 1 }
 0x156   :  { %532 = vsyncpa [#allocation4], 1 }
 0x157   :  { %533 = vsyncpa [#allocation7], 1 }

</bundles_post_ra>
